<compile_context>
chip_gen: v7x
topology: tpu7x:2x2x1
jax: 0.10.0
libtpu: 0.0.40
codegen_flags: <defaults>
</compile_context>

<pallas_src>
import functools

import jax
import jax.numpy as jnp
import numpy as np
from jax.experimental import pallas as pl
from jax.experimental.pallas import tpu as pltpu


def st_gcn_kernel(x_ref, wg_ref, ak_ref, b1_ref, wt_ref, wr_ref, ob_ref, o_ref,
                  *, K, KT, T, V, Cout):
    """One grid step = one batch sample, channels-first (C, T*V) layout."""
    f32 = jnp.float32
    TV = T * V
    X = x_ref[0]                                                # (Cin, T*V), lane-dense

    # ---- graph conv: adjacency contracted first (Cin < Cout => cheaper side) ----
    # XA[k*Cin+i, t*V+w] = sum_v x[i, t, v] * A[k, v, w]  via block-diag I_T (x) A_k
    xa = [jnp.dot(X, ak_ref[k], preferred_element_type=f32) for k in range(K)]
    XA = jnp.concatenate(xa, axis=0)                            # (K*Cin, T*V)
    # single GEMM over (k, i); bn1 scale is folded into wg_ref, the gcn conv bias
    # (pushed through A) and bn1 shift are folded into b1_ref
    y = jnp.dot(wg_ref[...], XA, preferred_element_type=f32) + b1_ref[...]  # (Cout, T*V)
    yr = jnp.maximum(y, 0.0)

    # ---- tcn: zero-pad T (as lanes), im2col, one GEMM; bn2 scale folded into wt ----
    pad = (KT - 1) // 2
    if pad > 0:
        zp = jnp.zeros((Cout, pad * V), f32)
        buf = jnp.concatenate([zp, yr, zp], axis=1)             # (Cout, (T+2*pad)*V)
    else:
        buf = yr
    col = jnp.concatenate([buf[:, i * V:i * V + TV] for i in range(KT)], axis=0)  # (KT*Cout, T*V)
    z = jnp.dot(wt_ref[...], col, preferred_element_type=f32)                     # (Cout, T*V)

    # ---- residual 1x1 conv (its BN folded) + combined bias + ReLU, lane-dense store ----
    res = jnp.dot(wr_ref[...], X, preferred_element_type=f32)                     # (Cout, T*V)
    o_ref[0] = jnp.maximum(z + res + ob_ref[...], 0.0).astype(o_ref.dtype)


@jax.jit
def st_gcn_block_forward(x_nchw, A, params):
    """x_nchw: (N, Cin, T, V) float32, A: (K, V, V). Returns (N, Cout, T, V)."""
    (wg, bg, bn1s, bn1b, wt, bt, bn2s, bn2b, wr, br, bnrs, bnrb) = params
    N, Cin, T, V = x_nchw.shape
    K = A.shape[0]
    KT = wt.shape[0]
    Cout = wr.shape[1]
    TV = T * V
    f32 = jnp.float32

    # Consume NCHW directly: pure reshape, no transpose (no extra HBM pass).
    x = x_nchw.reshape(N, Cin, TV)

    # ---- wrapper-side algebra: fold BN affines & pre-shape operands ----
    # block-diagonal adjacency operators akron[k] = I_T (x) A[k] so the in-kernel
    # node contraction is a plain lane-dense GEMM (no transposes, no relayouts)
    akron = (jnp.eye(T, dtype=f32)[None, :, None, :, None] *
             A[:, None, :, None, :]).reshape(K, TV, TV)

    # gcn weights as (Cout, K*Cin), bn1 scale folded in
    wg_cf = jnp.transpose(wg.reshape(Cin, K, Cout), (2, 1, 0)).reshape(Cout, K * Cin)
    wg_cf = wg_cf * bn1s[0][:, None]
    # gcn conv bias pushed through A, plus bn1 shift -> additive (Cout, T*V) map
    colsumA = A.sum(axis=1)                                        # (K, V)
    bias_gcn = jnp.einsum('kc,kw->cw', bg.reshape(K, Cout), colsumA)  # (Cout, V)
    b1 = jnp.tile(bn1s[0][:, None] * bias_gcn + bn1b[0][:, None], (1, T))  # (Cout, T*V)

    # temporal conv weights as (Cout, KT*Cout), bn2 scale folded in
    wt_cf = jnp.transpose(wt, (2, 0, 1)).reshape(Cout, KT * Cout) * bn2s[0][:, None]

    # residual 1x1 conv with its BN folded in
    wr_cf = wr.T * bnrs[0][:, None]                                # (Cout, Cin)

    # all post-conv shifts combined into a single per-channel bias
    ob = (bn2s[0] * bt[0] + bn2b[0] + bnrs[0] * br[0] + bnrb[0]).reshape(Cout, 1)

    kernel = functools.partial(st_gcn_kernel, K=K, KT=KT, T=T, V=V, Cout=Cout)
    out = pl.pallas_call(
        kernel,
        out_shape=jax.ShapeDtypeStruct((N, Cout, TV), f32),
        grid_spec=pltpu.PrefetchScalarGridSpec(
            num_scalar_prefetch=0,
            grid=(N,),
            in_specs=[
                pl.BlockSpec((1, Cin, TV), lambda n: (n, 0, 0)),
                pl.BlockSpec(wg_cf.shape, lambda n: (0, 0)),
                pl.BlockSpec(akron.shape, lambda n: (0, 0, 0)),
                pl.BlockSpec(b1.shape, lambda n: (0, 0)),
                pl.BlockSpec(wt_cf.shape, lambda n: (0, 0)),
                pl.BlockSpec(wr_cf.shape, lambda n: (0, 0)),
                pl.BlockSpec(ob.shape, lambda n: (0, 0)),
            ],
            out_specs=pl.BlockSpec((1, Cout, TV), lambda n: (n, 0, 0)),
        ),
        compiler_params=pltpu.CompilerParams(
            dimension_semantics=("parallel",)),
    )(x, wg_cf, akron, b1, wt_cf, wr_cf, ob)

    # Output was stored lane-dense as (N, Cout, T*V); pure reshape back to NCHW.
    return out.reshape(N, Cout, T, V)


def init_params(key, Cin, Cout, K, KT):
    """Deterministic synthetic parameters (PyTorch shapes, BN folded to scale/shift)."""
    keys = jax.random.split(key, 9)
    s = 0.1
    wg = s * jax.random.normal(keys[0], (Cin, K * Cout), jnp.float32)   # Conv2d(Cin, K*Cout, 1x1).weight^T
    bg = s * jax.random.normal(keys[1], (1, K * Cout), jnp.float32)
    wt = s * jax.random.normal(keys[2], (KT, Cout, Cout), jnp.float32)  # wt[i, cin, cout] = W[cout, cin, i, 0]
    bt = s * jax.random.normal(keys[3], (1, Cout), jnp.float32)
    wr = s * jax.random.normal(keys[4], (Cin, Cout), jnp.float32)       # residual 1x1 conv weight^T
    br = s * jax.random.normal(keys[5], (1, Cout), jnp.float32)

    def bn(k):
        k1, k2, k3, k4 = jax.random.split(k, 4)
        gamma = 1.0 + 0.1 * jax.random.normal(k1, (Cout,), jnp.float32)
        beta = 0.1 * jax.random.normal(k2, (Cout,), jnp.float32)
        mean = 0.1 * jax.random.normal(k3, (Cout,), jnp.float32)
        var = jnp.abs(jax.random.normal(k4, (Cout,), jnp.float32)) + 0.5
        eps = 1e-5
        scale = gamma / jnp.sqrt(var + eps)
        shift = beta - mean * scale
        return scale.reshape(1, Cout), shift.reshape(1, Cout)

    bn1s, bn1b = bn(keys[6])
    bn2s, bn2b = bn(keys[7])
    bnrs, bnrb = bn(keys[8])
    return (wg, bg, bn1s, bn1b, wt, bt, bn2s, bn2b, wr, br, bnrs, bnrb)


def st_gcn_ref(x, A, params):
    """Pure-JAX reference in NCHW, mirroring the PyTorch forward (eval mode)."""
    (wg, bg, bn1s, bn1b, wt, bt, bn2s, bn2b, wr, br, bnrs, bnrb) = params
    N, Cin, T, V = x.shape
    K = A.shape[0]
    KT = wt.shape[0]
    Cout = wr.shape[1]

    def chan(v):  # (1, C) -> broadcast over NCHW channel dim
        return v[0][None, :, None, None]

    h = jnp.einsum('co,nctv->notv', wg, x) + chan(bg)        # 1x1 conv -> (N, K*Cout, T, V)
    h = h.reshape(N, K, Cout, T, V)
    y = jnp.einsum('nkctv,kvw->nctw', h, A)
    y = y * chan(bn1s) + chan(bn1b)
    yr = jnp.maximum(y, 0.0)

    pad = (KT - 1) // 2
    yp = jnp.pad(yr, ((0, 0), (0, 0), (pad, pad), (0, 0)))
    z = jnp.zeros((N, Cout, T, V), jnp.float32)
    for i in range(KT):
        z = z + jnp.einsum('io,nitv->notv', wt[i], yp[:, :, i:i + T, :])
    z = z + chan(bt)
    z = z * chan(bn2s) + chan(bn2b)

    res = jnp.einsum('co,nctv->notv', wr, x) + chan(br)
    res = res * chan(bnrs) + chan(bnrb)
    return jnp.maximum(z + res, 0.0)


if __name__ == "__main__":
    N, Cin, Cout, T, V = 2, 4, 8, 8, 16          # T*V = 128 -> lane-dense tiles
    kernel_size = (3, 3)                         # (temporal kernel KT, spatial kernel K)
    KT, K = kernel_size

    key = jax.random.PRNGKey(0)
    kx, ka, kp = jax.random.split(key, 3)
    x = jax.random.normal(kx, (N, Cin, T, V), jnp.float32)     # (N, C, T, V) — PyTorch NCHW
    A = jax.random.normal(ka, (K, V, V), jnp.float32)
    params = init_params(kp, Cin, Cout, K, KT)

    out = st_gcn_block_forward(x, A, params)
    out = jax.block_until_ready(out)
    assert out.shape == (N, Cout, T, V)

    ref = st_gcn_ref(x, A, params)
    np.testing.assert_allclose(np.asarray(out), np.asarray(ref), rtol=1e-4, atol=1e-4)

    print("KERNEL_OK")
</pallas_src>

<mosaic_0001>
module attributes {stable_mosaic.version = 11 : i64} {
  func.func @st_gcn_kernel(%arg0: i32, %arg1: memref<1x4x128xf32, #tpu.memory_space<vmem>>, %arg2: memref<8x12xf32, #tpu.memory_space<vmem>>, %arg3: memref<3x128x128xf32, #tpu.memory_space<vmem>>, %arg4: memref<8x128xf32, #tpu.memory_space<vmem>>, %arg5: memref<8x24xf32, #tpu.memory_space<vmem>>, %arg6: memref<8x4xf32, #tpu.memory_space<vmem>>, %arg7: memref<8x1xf32, #tpu.memory_space<vmem>>, %arg8: memref<1x8x128xf32, #tpu.memory_space<vmem>>) attributes {dimension_semantics = [#tpu.dimension_semantics<parallel>], iteration_bounds = array<i64: 2>, scalar_prefetch = 0 : i64, scratch_operands = 0 : i64, tpu.core_type = #tpu.core_type<tc>, window_params = [{transform_indices = @transform_0, window_bounds = array<i64: 1, 4, 128>}, {pipeline_mode = #tpu.pipeline_mode<synchronous>, transform_indices = @transform_1, window_bounds = array<i64: 8, 12>}, {pipeline_mode = #tpu.pipeline_mode<synchronous>, transform_indices = @transform_2, window_bounds = array<i64: 3, 128, 128>}, {pipeline_mode = #tpu.pipeline_mode<synchronous>, transform_indices = @transform_3, window_bounds = array<i64: 8, 128>}, {pipeline_mode = #tpu.pipeline_mode<synchronous>, transform_indices = @transform_4, window_bounds = array<i64: 8, 24>}, {pipeline_mode = #tpu.pipeline_mode<synchronous>, transform_indices = @transform_5, window_bounds = array<i64: 8, 4>}, {pipeline_mode = #tpu.pipeline_mode<synchronous>, transform_indices = @transform_6, window_bounds = array<i64: 8, 1>}, {transform_indices = @transform_7, window_bounds = array<i64: 1, 8, 128>}]} {
    %c0 = arith.constant 0 : index
    %c0_0 = arith.constant 0 : index
    %c0_1 = arith.constant 0 : index
    %0 = vector.load %arg1[%c0, %c0_0, %c0_1] : memref<1x4x128xf32, #tpu.memory_space<vmem>>, vector<1x4x128xf32>
    %1 = vector.shape_cast %0 : vector<1x4x128xf32> to vector<4x128xf32>
    %c0_2 = arith.constant 0 : index
    %c0_3 = arith.constant 0 : index
    %c0_4 = arith.constant 0 : index
    %2 = vector.load %arg3[%c0_2, %c0_3, %c0_4] : memref<3x128x128xf32, #tpu.memory_space<vmem>>, vector<1x128x128xf32>
    %3 = vector.shape_cast %2 : vector<1x128x128xf32> to vector<128x128xf32>
    %cst = arith.constant dense<0.000000e+00> : vector<4x128xf32>
    %4 = tpu.matmul %1, %3, %cst {dimension_numbers = #tpu.dot_dimension_numbers<[1], [0], [0], [1], [0, 0, 1, 1], [], []>} : vector<4x128xf32>, vector<128x128xf32>, vector<4x128xf32> -> vector<4x128xf32>
    %c1 = arith.constant 1 : index
    %c0_5 = arith.constant 0 : index
    %c0_6 = arith.constant 0 : index
    %5 = vector.load %arg3[%c1, %c0_5, %c0_6] : memref<3x128x128xf32, #tpu.memory_space<vmem>>, vector<1x128x128xf32>
    %6 = vector.shape_cast %5 : vector<1x128x128xf32> to vector<128x128xf32>
    %cst_7 = arith.constant dense<0.000000e+00> : vector<4x128xf32>
    %7 = tpu.matmul %1, %6, %cst_7 {dimension_numbers = #tpu.dot_dimension_numbers<[1], [0], [0], [1], [0, 0, 1, 1], [], []>} : vector<4x128xf32>, vector<128x128xf32>, vector<4x128xf32> -> vector<4x128xf32>
    %c2 = arith.constant 2 : index
    %c0_8 = arith.constant 0 : index
    %c0_9 = arith.constant 0 : index
    %8 = vector.load %arg3[%c2, %c0_8, %c0_9] : memref<3x128x128xf32, #tpu.memory_space<vmem>>, vector<1x128x128xf32>
    %9 = vector.shape_cast %8 : vector<1x128x128xf32> to vector<128x128xf32>
    %cst_10 = arith.constant dense<0.000000e+00> : vector<4x128xf32>
    %10 = tpu.matmul %1, %9, %cst_10 {dimension_numbers = #tpu.dot_dimension_numbers<[1], [0], [0], [1], [0, 0, 1, 1], [], []>} : vector<4x128xf32>, vector<128x128xf32>, vector<4x128xf32> -> vector<4x128xf32>
    %11 = tpu.concatenate %4, %7, %10 in 0 : vector<4x128xf32>, vector<4x128xf32>, vector<4x128xf32> -> vector<12x128xf32>
    %c0_11 = arith.constant 0 : index
    %c0_12 = arith.constant 0 : index
    %12 = vector.load %arg2[%c0_11, %c0_12] : memref<8x12xf32, #tpu.memory_space<vmem>>, vector<8x12xf32>
    %cst_13 = arith.constant dense<0.000000e+00> : vector<8x128xf32>
    %13 = tpu.matmul %12, %11, %cst_13 {dimension_numbers = #tpu.dot_dimension_numbers<[1], [0], [0], [1], [0, 0, 1, 1], [], []>} : vector<8x12xf32>, vector<12x128xf32>, vector<8x128xf32> -> vector<8x128xf32>
    %c0_14 = arith.constant 0 : index
    %c0_15 = arith.constant 0 : index
    %14 = vector.load %arg4[%c0_14, %c0_15] : memref<8x128xf32, #tpu.memory_space<vmem>>, vector<8x128xf32>
    %15 = arith.addf %13, %14 : vector<8x128xf32>
    %cst_16 = arith.constant 0.000000e+00 : f32
    %16 = vector.broadcast %cst_16 : f32 to vector<8x128xf32>
    %17 = arith.maximumf %15, %16 : vector<8x128xf32>
    %cst_17 = arith.constant 0.000000e+00 : f32
    %18 = vector.broadcast %cst_17 : f32 to vector<8x16xf32>
    %19 = tpu.concatenate %18, %17, %18 in 1 : vector<8x16xf32>, vector<8x128xf32>, vector<8x16xf32> -> vector<8x160xf32>
    %20 = vector.extract_strided_slice %19 {offsets = [0, 0], sizes = [8, 128], strides = [1, 1]} : vector<8x160xf32> to vector<8x128xf32>
    %21 = vector.extract_strided_slice %19 {offsets = [0, 16], sizes = [8, 128], strides = [1, 1]} : vector<8x160xf32> to vector<8x128xf32>
    %22 = vector.extract_strided_slice %19 {offsets = [0, 32], sizes = [8, 128], strides = [1, 1]} : vector<8x160xf32> to vector<8x128xf32>
    %23 = tpu.concatenate %20, %21, %22 in 0 : vector<8x128xf32>, vector<8x128xf32>, vector<8x128xf32> -> vector<24x128xf32>
    %c0_18 = arith.constant 0 : index
    %c0_19 = arith.constant 0 : index
    %24 = vector.load %arg5[%c0_18, %c0_19] : memref<8x24xf32, #tpu.memory_space<vmem>>, vector<8x24xf32>
    %cst_20 = arith.constant dense<0.000000e+00> : vector<8x128xf32>
    %25 = tpu.matmul %24, %23, %cst_20 {dimension_numbers = #tpu.dot_dimension_numbers<[1], [0], [0], [1], [0, 0, 1, 1], [], []>} : vector<8x24xf32>, vector<24x128xf32>, vector<8x128xf32> -> vector<8x128xf32>
    %c0_21 = arith.constant 0 : index
    %c0_22 = arith.constant 0 : index
    %26 = vector.load %arg6[%c0_21, %c0_22] : memref<8x4xf32, #tpu.memory_space<vmem>>, vector<8x4xf32>
    %cst_23 = arith.constant dense<0.000000e+00> : vector<8x128xf32>
    %27 = tpu.matmul %26, %1, %cst_23 {dimension_numbers = #tpu.dot_dimension_numbers<[1], [0], [0], [1], [0, 0, 1, 1], [], []>} : vector<8x4xf32>, vector<4x128xf32>, vector<8x128xf32> -> vector<8x128xf32>
    %28 = arith.addf %25, %27 : vector<8x128xf32>
    %c0_24 = arith.constant 0 : index
    %c0_25 = arith.constant 0 : index
    %29 = vector.load %arg7[%c0_24, %c0_25] : memref<8x1xf32, #tpu.memory_space<vmem>>, vector<8x1xf32>
    %30 = vector.broadcast %29 : vector<8x1xf32> to vector<8x128xf32>
    %31 = arith.addf %28, %30 : vector<8x128xf32>
    %cst_26 = arith.constant 0.000000e+00 : f32
    %32 = vector.broadcast %cst_26 : f32 to vector<8x128xf32>
    %33 = arith.maximumf %31, %32 : vector<8x128xf32>
    %c0_27 = arith.constant 0 : index
    %c0_28 = arith.constant 0 : index
    %c0_29 = arith.constant 0 : index
    %34 = vector.load %arg8[%c0_27, %c0_28, %c0_29] : memref<1x8x128xf32, #tpu.memory_space<vmem>>, vector<1x8x128xf32>
    %35 = vector.shape_cast %34 : vector<1x8x128xf32> to vector<8x128xf32>
    %36 = vector.shape_cast %33 : vector<8x128xf32> to vector<1x8x128xf32>
    tpu.vector_store %arg8[%c0_27, %c0_28, %c0_29], %36 {strides = array<i32>} : memref<1x8x128xf32, #tpu.memory_space<vmem>>, vector<1x8x128xf32>,
    return
  }
  func.func @transform_0(%arg0: i32) -> (i32, i32, i32) {
    %c0_i32 = arith.constant 0 : i32
    %c0_i32_0 = arith.constant 0 : i32
    %c0_i32_1 = arith.constant 0 : i32
    return %arg0, %c0_i32, %c0_i32_0 : i32, i32, i32
  }
  func.func @transform_1(%arg0: i32) -> (i32, i32) {
    %c0_i32 = arith.constant 0 : i32
    %c0_i32_0 = arith.constant 0 : i32
    %c0_i32_1 = arith.constant 0 : i32
    return %c0_i32, %c0_i32_0 : i32, i32
  }
  func.func @transform_2(%arg0: i32) -> (i32, i32, i32) {
    %c0_i32 = arith.constant 0 : i32
    %c0_i32_0 = arith.constant 0 : i32
    %c0_i32_1 = arith.constant 0 : i32
    %c0_i32_2 = arith.constant 0 : i32
    return %c0_i32, %c0_i32_0, %c0_i32_1 : i32, i32, i32
  }
  func.func @transform_3(%arg0: i32) -> (i32, i32) {
    %c0_i32 = arith.constant 0 : i32
    %c0_i32_0 = arith.constant 0 : i32
    %c0_i32_1 = arith.constant 0 : i32
    return %c0_i32, %c0_i32_0 : i32, i32
  }
  func.func @transform_4(%arg0: i32) -> (i32, i32) {
    %c0_i32 = arith.constant 0 : i32
    %c0_i32_0 = arith.constant 0 : i32
    %c0_i32_1 = arith.constant 0 : i32
    return %c0_i32, %c0_i32_0 : i32, i32
  }
  func.func @transform_5(%arg0: i32) -> (i32, i32) {
    %c0_i32 = arith.constant 0 : i32
    %c0_i32_0 = arith.constant 0 : i32
    %c0_i32_1 = arith.constant 0 : i32
    return %c0_i32, %c0_i32_0 : i32, i32
  }
  func.func @transform_6(%arg0: i32) -> (i32, i32) {
    %c0_i32 = arith.constant 0 : i32
    %c0_i32_0 = arith.constant 0 : i32
    %c0_i32_1 = arith.constant 0 : i32
    return %c0_i32, %c0_i32_0 : i32, i32
  }
  func.func @transform_7(%arg0: i32) -> (i32, i32, i32) {
    %c0_i32 = arith.constant 0 : i32
    %c0_i32_0 = arith.constant 0 : i32
    %c0_i32_1 = arith.constant 0 : i32
    return %arg0, %c0_i32, %c0_i32_0 : i32, i32, i32
  }
}

</mosaic_0001>

<bundles_post_ra>
// kernel: tile.9
= control target key start
LH: loop header
LB: loop body
LE: loop exit
PB: predicated region body
PF: predicated region fallthrough
CT: control target
= control target key end

     0   :  { %vm4_vm0 = vcmask 1047556   ;;  %s99_s14 = smov 112   ;;  %s100_s19 = smov 80   ;;  %vm6_vm1 = vcmask 130048   ;;  %vm16_vm2 = vcmask 1048448   ;;  %vm26_vm3 = vcmask 917248   ;;  %s196_s0 = inlined_call_operand.vmem [shape: f32[8,8,16], index: 0, kind: input, shape index: {}]   ;;  %s197_s1 = inlined_call_operand.vmem [shape: f32[8,128], index: 1, kind: output, shape index: {}]  }
   0x1   :  { %v78_v0 = vld [vmem:[%s196_s0 + $0x7] ss:$8 sm:$0xf]   ;;  %v82_v3 = vld [vmem:[%s196_s0 + $0x5] ss:$8 sm:$0xf]  }
   0x2   :  { %v79_v1 = vld [vmem:[%s196_s0 + $0x7] ss:$8 sm:$0xf0]   ;;  %v83_v4 = vld [vmem:[%s196_s0 + $0x5] ss:$8 sm:$0xf0]  }
   0x3   :  { %v13_v2 = vsel %vm4_vm0, %v79_v1, %v78_v0  ;;  %v33_v5 = vsel %vm4_vm0, %v83_v4, %v82_v3  ;;  %v80_v6 = vld [vmem:[%s196_s0 + $0x6] ss:$8 sm:$0xf]   ;;  %v84_v9 = vld [vmem:[%s196_s0 + $0x4] ss:$8 sm:$0xf]  }
   0x4   :  { %14 = vrot.lane.b32.xlu0 %v13_v2, %s99_s14  ;;  %v81_v7 = vld [vmem:[%s196_s0 + $0x6] ss:$8 sm:$0xf0]   ;;  %34 = vrot.lane.b32.xlu1 %v33_v5, %s100_s19  ;;  %v85_v10 = vld [vmem:[%s196_s0 + $0x4] ss:$8 sm:$0xf0]  }
   0x5   :  { %v23_v8 = vsel %vm4_vm0, %v81_v7, %v80_v6  ;;  %v86_v11 = vld [vmem:[%s196_s0 + $0x3] ss:$8 sm:$0xf]   ;;  %v43_v12 = vsel %vm4_vm0, %v85_v10, %v84_v9  ;;  %s101_s28 = smov 96   ;;  %s102_s4 = smov 64   ;;  %vm36_vm4 = vcmask 786048  }
   0x6   :  { %v87_v13 = vld [vmem:[%s196_s0 + $0x3] ss:$8 sm:$0xf0]   ;;  %v88_v14 = vld [vmem:[%s196_s0 + $0x2] ss:$8 sm:$0xf]  }
   0x7   :  { %v89_v15 = vld [vmem:[%s196_s0 + $0x2] ss:$8 sm:$0xf0]   ;;  %v53_v16 = vsel %vm4_vm0, %v87_v13, %v86_v11  ;;  %v90_v17 = vld [vmem:[%s196_s0 + $0x1] ss:$8 sm:$0xf]  }
   0x8   :  { %24 = vrot.lane.b32.xlu0 %v23_v8, %s101_s28  ;;  %44 = vrot.lane.b32.xlu1 %v43_v12, %s102_s4  ;;  %v63_v18 = vsel %vm4_vm0, %v89_v15, %v88_v14  ;;  %v91_v19 = vld [vmem:[%s196_s0 + $0x1] ss:$8 sm:$0xf0]   ;;  %v2_v20 = vld [vmem:[%s196_s0] ss:$8 sm:$0xf]  }
   0x9   :  { %v3_v21 = vld [vmem:[%s196_s0] ss:$8 sm:$0xf0]   ;;  %s103_s0 = smov 48   ;;  %s104_s13 = smov 32   ;;  %v73_v23 = vsel %vm4_vm0, %v91_v19, %v90_v17  ;;  %vm46_vm5 = vcmask 654848  }
   0xa   :  { %v5_v22 = vsel %vm4_vm0, %v3_v21, %v2_v20  ;;  %s105_s16 = smov 16   ;;  %vm56_vm6 = vcmask 523648   ;;  %vm66_vm7 = vcmask 392448   ;;  %vm76_vm8 = vcmask 261248  }
   0xb   :  { %7 = vst.msk [vmem:[%s197_s1] sm:$0xff] %vm6_vm1, %v5_v22  }
   0xc   :  { %54 = vrot.lane.b32.xlu0 %v53_v16, %s103_s0  ;;  %64 = vrot.lane.b32.xlu1 %v63_v18, %s104_s13 }
  0x10   :  { %74 = vrot.lane.b32.xlu0 %v73_v23, %s105_s16 }
  0x76   :  { %v15_v24 = vpop.permute.xlu0 %14   ;;  %v35_v25 = vpop.permute.xlu1 %34  }
  0x77   :  { %17 = vst.msk [vmem:[%s197_s1] sm:$0xff] %vm16_vm2, %v15_v24  }
  0x7a   :  { %v25_v26 = vpop.permute.xlu0 %24   ;;  %v45_v27 = vpop.permute.xlu1 %44  }
  0x7b   :  { %27 = vst.msk [vmem:[%s197_s1] sm:$0xff] %vm26_vm3, %v25_v26  }
  0x7c   :  { %37 = vst.msk [vmem:[%s197_s1] sm:$0xff] %vm36_vm4, %v35_v25  }
  0x7d   :  { %47 = vst.msk [vmem:[%s197_s1] sm:$0xff] %vm46_vm5, %v45_v27  }
  0x7e   :  { %v55_v28 = vpop.permute.xlu0 %54   ;;  %v65_v29 = vpop.permute.xlu1 %64  }
  0x7f   :  { %57 = vst.msk [vmem:[%s197_s1] sm:$0xff] %vm56_vm6, %v55_v28  }
  0x80   :  { %67 = vst.msk [vmem:[%s197_s1] sm:$0xff] %vm66_vm7, %v65_v29  }
  0x82   :  { %v75_v30 = vpop.permute.xlu0 %74  }
  0x83   :  { %77 = vst.msk [vmem:[%s197_s1] sm:$0xff] %vm76_vm8, %v75_v30  }

// kernel: st_gcn_block_forward.1
= control target key start
LH: loop header
LB: loop body
LE: loop exit
PB: predicated region body
PF: predicated region fallthrough
CT: control target
= control target key end

     0   :  { %s1250_s24 = smov 0   ;;  %s1482_s0 = inlined_call_operand.vmem [shape: f32[2,4,128], index: 0, kind: input, shape index: {}]   ;;  %s1483_s1 = inlined_call_operand.vmem [shape: f32[8,12], index: 1, kind: input, shape index: {}]   ;;  %s1484_s2 = inlined_call_operand.vmem [shape: f32[3,128,128], index: 2, kind: input, shape index: {}]   ;;  %s1485_s3 = inlined_call_operand.vmem [shape: f32[8,128], index: 3, kind: input, shape index: {}]   ;;  %s1486_s4 = inlined_call_operand.vmem [shape: f32[8,24], index: 4, kind: input, shape index: {}]   ;;  %s1487_s5 = inlined_call_operand.vmem [shape: f32[8,4], index: 5, kind: input, shape index: {}]   ;;  %s1488_s6 = inlined_call_operand.vmem [shape: f32[8,1], index: 6, kind: input, shape index: {}]   ;;  %s1489_s7 = inlined_call_operand.vmem [shape: f32[2,8,128], index: 7, kind: output, shape index: {}]  }
   0x1 LB: > { %s858_s25 = sadd.s32 4294967295, %s1200_s24   ;;  %p862_p0 = scmp.ge.s32.totalorder %s1200_s24, 1  ;;  %s1200_s24 = sphi %s1250_s24, %s17_s24  }
   0x2   : > { %p236_p1 = scmp.lt.s32.totalorder %s1200_s24, 3 }
   0x4   : > { %p237_p2 = pnand %p862_p0, %p236_p1 }
   0x5   : > { %v275_v0 = vld [vmem:[%s1484_s2] sm:$0xff] (!%p237_p2)  ;;  %v276_v1 = vld [vmem:[%s1484_s2 + $0x8] sm:$0xff] (!%p237_p2)  ;;  %v1202_v3 = vmov (!%p237_p2), 0.0|0.0   ;;  %v277_v6 = vld [vmem:[%s1484_s2 + $0x10] sm:$0xff] (!%p237_p2)  ;;  %vm1203_vm0 = vmmov (!%p237_p2), 0   ;;  %v1204_v11 = vmov (!%p237_p2), 0.0  }
   0x6   : > { %240 = sbr.rel (%p237_p2) target bundleno = 966 (0x3c6), region = 48  ;;  %v865_v2 = vld [vmem:[%s1484_s2 + $0x80] sm:$0xff] (!%p237_p2)  ;;  %1092 = vmatprep.subr.bf16.mxu0 (!%p237_p2), %v1202_v3  ;;  %1116 = vmatprep.subr.bf16.mxu1 (!%p237_p2), %v1202_v3  ;;  %v1093_v4 = vpack.c.bf16 (!%p237_p2), %v276_v1, %v275_v0  ;;  %v866_v5 = vld [vmem:[%s1484_s2 + $0x88] sm:$0xff] (!%p237_p2)  ;;  %v278_v7 = vld [vmem:[%s1484_s2 + $0x18] sm:$0xff] (!%p237_p2)  ;;  %p266_p3 = scmp.lt.s32.totalorder (!%p237_p2), %s858_s25, 1  ;;  %vm538_vm1 = vcmask (!%p237_p2), 1043456  }
   0x7   : > { %v1117_v8 = vpack.c.bf16 (!%p237_p2), %v866_v5, %v865_v2  ;;  %v867_v9 = vld [vmem:[%s1484_s2 + $0x90] sm:$0xff] (!%p237_p2)  ;;  %v868_v10 = vld [vmem:[%s1484_s2 + $0x98] sm:$0xff] (!%p237_p2)  ;;  %998 = vmatprep.mubr.msk.f32.mxu0 (!%p237_p2), %vm1203_vm0, %v1204_v11  ;;  %1033 = vmatprep.mubr.msk.f32.mxu1 (!%p237_p2), %vm1203_vm0, %v1204_v11  ;;  %v1096_v12 = vpack.c.bf16 (!%p237_p2), %v278_v7, %v277_v6  ;;  %v279_v14 = vld [vmem:[%s1484_s2 + $0x20] sm:$0xff] (!%p237_p2)  ;;  %vm1205_vm2 = vmmov (!%p237_p2), 1   ;;  %vm542_vm4 = vcmask (!%p237_p2), 97280   ;;  %s1206_s23 = smov (!%p237_p2), 16  }
   0x8   : > { %1094 = vmatpush3.bf16.msra.mxu0 (!%p237_p2), %v1093_v4  ;;  %v1120_v13 = vpack.c.bf16 (!%p237_p2), %v868_v10, %v867_v9  ;;  %v280_v15 = vld [vmem:[%s1484_s2 + $0x28] sm:$0xff] (!%p237_p2)  ;;  %v869_v16 = vld [vmem:[%s1484_s2 + $0xa0] sm:$0xff] (!%p237_p2)  ;;  %v281_v20 = vld [vmem:[%s1484_s2 + $0x30] sm:$0xff] (!%p237_p2)  ;;  %vm645_vm5 = vcmask (!%p237_p2), 31744   ;;  %vm624_vm6 = vcmask (!%p237_p2), 130048   ;;  %s1207_s28 = smov (!%p237_p2), 96  }
   0x9   : > { %1118 = vmatpush3.bf16.msra.mxu1 (!%p237_p2), %v1117_v8  ;;  %1095 = vmatprep.subr.bf16.mxu0 (!%p237_p2), %v1202_v3  ;;  %v870_v17 = vld [vmem:[%s1484_s2 + $0xa8] sm:$0xff] (!%p237_p2)  ;;  %v1099_v18 = vpack.c.bf16 (!%p237_p2), %v280_v15, %v279_v14  ;;  %v282_v21 = vld [vmem:[%s1484_s2 + $0x38] sm:$0xff] (!%p237_p2)  ;;  %v871_v22 = vld [vmem:[%s1484_s2 + $0xb0] sm:$0xff] (!%p237_p2)  ;;  %s1209_s29 = smov (!%p237_p2), 112   ;;  %vm633_vm8 = vcmask (!%p237_p2), 916480   ;;  %vm640_vm10 = vcmask (!%p237_p2), 785408  }
   0xa   : > { %1119 = vmatprep.subr.bf16.mxu1 (!%p237_p2), %v1202_v3  ;;  %v1123_v19 = vpack.c.bf16 (!%p237_p2), %v870_v17, %v869_v16  ;;  %v872_v23 = vld [vmem:[%s1484_s2 + $0xb8] sm:$0xff] (!%p237_p2)  ;;  %v1102_v24 = vpack.c.bf16 (!%p237_p2), %v282_v21, %v281_v20  ;;  %v283_v26 = vld [vmem:[%s1484_s2 + $0x40] sm:$0xff] (!%p237_p2)  ;;  %v284_v27 = vld [vmem:[%s1484_s2 + $0x48] sm:$0xff] (!%p237_p2)  ;;  %vm722_vm11 = vcmask (!%p237_p2), 195584  }
   0xb   : > { %v1126_v25 = vpack.c.bf16 (!%p237_p2), %v872_v23, %v871_v22  ;;  %v873_v28 = vld [vmem:[%s1484_s2 + $0xc0] sm:$0xff] (!%p237_p2)  ;;  %v874_v29 = vld [vmem:[%s1484_s2 + $0xc8] sm:$0xff] (!%p237_p2)  ;;  %v1105_v30 = vpack.c.bf16 (!%p237_p2), %v284_v27, %v283_v26  ;;  %v285_v32 = vld [vmem:[%s1484_s2 + $0x50] sm:$0xff] (!%p237_p2) }
   0xc   : > { %1097 = vmatpush3.bf16.msra.mxu0 (!%p237_p2), %v1096_v12  ;;  %v1129_v31 = vpack.c.bf16 (!%p237_p2), %v874_v29, %v873_v28  ;;  %v286_v33 = vld [vmem:[%s1484_s2 + $0x58] sm:$0xff] (!%p237_p2)  ;;  %v875_v34 = vld [vmem:[%s1484_s2 + $0xd0] sm:$0xff] (!%p237_p2)  ;;  %v287_v38 = vld [vmem:[%s1484_s2 + $0x60] sm:$0xff] (!%p237_p2) }
   0xd   : > { %1121 = vmatpush3.bf16.msra.mxu1 %v1120_v13  ;;  %1098 = vmatprep.subr.bf16.mxu0 %v1202_v3  ;;  %v876_v35 = vld [vmem:[%s1484_s2 + $0xd8] sm:$0xff]  ;;  %v1108_v36 = vpack.c.bf16 %v286_v33, %v285_v32  ;;  %v288_v39 = vld [vmem:[%s1484_s2 + $0x68] sm:$0xff]  ;;  %v877_v40 = vld [vmem:[%s1484_s2 + $0xe0] sm:$0xff]  ;;  %s1491_s25 = smov (!%p266_p3, %s858_s25), 1  ;;  %v1208_v32 = vmov 0  }
   0xe   : > { %1122 = vmatprep.subr.bf16.mxu1 %v1202_v3  ;;  %v1132_v37 = vpack.c.bf16 %v876_v35, %v875_v34  ;;  %v878_v41 = vld [vmem:[%s1484_s2 + $0xe8] sm:$0xff]  ;;  %v1111_v42 = vpack.c.bf16 %v288_v39, %v287_v38  ;;  %v289_v44 = vld [vmem:[%s1484_s2 + $0x70] sm:$0xff]  ;;  %v290_v45 = vld [vmem:[%s1484_s2 + $0x78] sm:$0xff]  ;;  %s863_s27 = sshll.u32 %s1491_s25, 2  ;;  %1193 = vset.pattern.permute.xlu0 %v1208_v32  ;;  %s864_s11 = sshll.u32 %s1491_s25, 3 }
   0xf   : > { %v1135_v43 = vpack.c.bf16 %v878_v41, %v877_v40  ;;  %v879_v46 = vld [vmem:[%s1484_s2 + $0xf0] sm:$0xff]  ;;  %v880_v47 = vld [vmem:[%s1484_s2 + $0xf8] sm:$0xff]  ;;  %v1114_v48 = vpack.c.bf16 %v290_v45, %v289_v44  ;;  %s269_s30 = scalar_lea.vmem %s1482_s0, %s863_s27  ;;  %v881_v50 = vld [vmem:[%s1484_s2 + $0x100] sm:$0xff]  ;;  %s273_s14 = scalar_lea.vmem %s1489_s7, %s864_s11 }
  0x10   : > { %1100 = vmatpush3.bf16.msra.mxu0 %v1099_v18  ;;  %v1138_v49 = vpack.c.bf16 %v880_v47, %v879_v46  ;;  %v882_v51 = vld [vmem:[%s1484_s2 + $0x108] sm:$0xff]  ;;  %v1390_v52 = vld [vmem:[%s269_s30] sm:$0xf]  ;;  %v883_v54 = vld [vmem:[%s1484_s2 + $0x110] sm:$0xff] }
  0x11   : > { %1124 = vmatpush3.bf16.msra.mxu1 %v1123_v19  ;;  %1101 = vmatprep.subr.bf16.mxu0 %v1202_v3  ;;  %v1141_v53 = vpack.c.bf16 %v882_v51, %v881_v50  ;;  %v884_v55 = vld [vmem:[%s1484_s2 + $0x118] sm:$0xff]  ;;  %v885_v57 = vld [vmem:[%s1484_s2 + $0x120] sm:$0xff]  ;;  %v886_v58 = vld [vmem:[%s1484_s2 + $0x128] sm:$0xff] }
  0x12   : > { %1125 = vmatprep.subr.bf16.mxu1 %v1202_v3  ;;  %v1144_v56 = vpack.c.bf16 %v884_v55, %v883_v54  ;;  %v1147_v59 = vpack.c.bf16 %v886_v58, %v885_v57  ;;  %v887_v60 = vld [vmem:[%s1484_s2 + $0x130] sm:$0xff]  ;;  %v888_v61 = vld [vmem:[%s1484_s2 + $0x138] sm:$0xff]  ;;  %v889_v63 = vld [vmem:[%s1484_s2 + $0x140] sm:$0xff] }
  0x13   : > { %v1150_v62 = vpack.c.bf16 %v888_v61, %v887_v60  ;;  %v890_v0 = vld [vmem:[%s1484_s2 + $0x148] sm:$0xff]  ;;  %v891_v2 = vld [vmem:[%s1484_s2 + $0x150] sm:$0xff]  ;;  %v892_v4 = vld [vmem:[%s1484_s2 + $0x158] sm:$0xff] }
  0x14   : > { %1103 = vmatpush3.bf16.msra.mxu0 %v1102_v24  ;;  %v1153_v1 = vpack.c.bf16 %v890_v0, %v889_v63  ;;  %v1156_v5 = vpack.c.bf16 %v892_v4, %v891_v2  ;;  %v893_v6 = vld [vmem:[%s1484_s2 + $0x160] sm:$0xff]  ;;  %v894_v7 = vld [vmem:[%s1484_s2 + $0x168] sm:$0xff]  ;;  %v895_v9 = vld [vmem:[%s1484_s2 + $0x170] sm:$0xff] }
  0x15   : > { %1127 = vmatpush3.bf16.msra.mxu1 %v1126_v25  ;;  %1104 = vmatprep.subr.bf16.mxu0 %v1202_v3  ;;  %v1159_v8 = vpack.c.bf16 %v894_v7, %v893_v6  ;;  %v896_v10 = vld [vmem:[%s1484_s2 + $0x178] sm:$0xff]  ;;  %vm1166_vm3 = vmpackc.low %vm538_vm1, %vm1205_vm2  ;;  %v540_v22 = vld [vmem:[%s1483_s1] sm:$0xff] }
  0x16   : > { %1128 = vmatprep.subr.bf16.mxu1 %v1202_v3  ;;  %v1162_v12 = vpack.c.bf16 %v896_v10, %v895_v9  ;;  %v541_v23 = vld [vmem:[%s1485_s3] sm:$0xff]  ;;  %vm901_vm7 = vmneg %vm624_vm6 }
  0x17   : > { %v644_v28 = vld [vmem:[%s1487_s5] sm:$0xff]  ;;  %vm1170_vm9 = vmpackc.low %vm1205_vm2, %vm901_vm7 }
  0x18   : > { %1106 = vmatpush3.bf16.msra.mxu0 %v1105_v30  ;;  %v796_v33 = vld [vmem:[%s1488_s6] sm:$0xff] }
  0x19   : > { %1130 = vmatpush3.bf16.msra.mxu1 %v1129_v31  ;;  %1107 = vmatprep.subr.bf16.mxu0 %v1202_v3  ;;  %v643_v41 = vld [vmem:[%s1486_s4] sm:$0xff] }
  0x1a   : > { %1131 = vmatprep.subr.bf16.mxu1 %v1202_v3 }
  0x1c   : > { %1109 = vmatpush3.bf16.msra.mxu0 %v1108_v36 }
  0x1d   : > { %1133 = vmatpush3.bf16.msra.mxu1 %v1132_v37  ;;  %1110 = vmatprep.subr.bf16.mxu0 %v1202_v3 }
  0x1e   : > { %1134 = vmatprep.subr.bf16.mxu1 %v1202_v3 }
  0x20   : > { %1112 = vmatpush3.bf16.msra.mxu0 %v1111_v42 }
  0x21   : > { %1136 = vmatpush3.bf16.msra.mxu1 %v1135_v43  ;;  %1113 = vmatprep.subr.bf16.mxu0 %v1202_v3 }
  0x22   : > { %1137 = vmatprep.subr.bf16.mxu1 %v1202_v3 }
  0x24   : > { %1115 = vmatpush3.bf16.msra.mxu0 %v1114_v48 }
  0x25   : > { %1139 = vmatpush3.bf16.msra.mxu1 %v1138_v49  ;;  %1140 = vmatprep.subr.bf16.mxu0 %v1202_v3 }
  0x26   : > { %1164 = vmatprep.subr.bf16.mxu1 %v1202_v3 }
  0x27   : > { %999 = vmatmul.mubr.f32.vlgmr.msra.gmra.mrb[0].mxu0 %v1390_v52 }
  0x28   : > { %1034 = vmatmul.mubr.f32.vlgmr.msra.gmra.mrb[0].mxu1 %v1390_v52  ;;  %1142 = vmatpush3.bf16.msra.mxu0 %v1141_v53 }
  0x29   : > { %1143 = vmatprep.subr.bf16.mxu0 %v1202_v3  ;;  %1068 = vmatprep.mubr.msk.f32.mxu0 %vm1203_vm0, %v1204_v11 }
  0x2a   : > { %1075 = vmatprep.mubr.msk.f32.mxu1 %vm1203_vm0, %v1204_v11 }
  0x2c   : > { %1145 = vmatpush3.bf16.msra.mxu0 %v1144_v56 }
  0x2d   : > { %1146 = vmatprep.subr.bf16.mxu0 %v1202_v3 }
  0x30   : > { %1148 = vmatpush3.bf16.msra.mxu0 %v1147_v59 }
  0x31   : > { %1149 = vmatprep.subr.bf16.mxu0 %v1202_v3 }
  0x34   : > { %1151 = vmatpush3.bf16.msra.mxu0 %v1150_v62 }
  0x35   : > { %1152 = vmatprep.subr.bf16.mxu0 %v1202_v3 }
  0x38   : > { %1154 = vmatpush3.bf16.msra.mxu0 %v1153_v1 }
  0x39   : > { %1155 = vmatprep.subr.bf16.mxu0 %v1202_v3 }
  0x3c   : > { %1157 = vmatpush3.bf16.msra.mxu0 %v1156_v5 }
  0x3d   : > { %1158 = vmatprep.subr.bf16.mxu0 %v1202_v3 }
  0x40   : > { %1160 = vmatpush3.bf16.msra.mxu0 %v1159_v8 }
  0x41   : > { %1161 = vmatprep.subr.bf16.mxu0 %v1202_v3 }
  0x44   : > { %1163 = vmatpush3.bf16.msra.mxu0 %v1162_v12 }
  0x47   : > { %1069 = vmatmul.mubr.f32.vlgmr.msra.gmra.mrb[2].mxu0 %v1390_v52 }
  0xfa   : > { %v357_v13 = vpop.f32.mrb[0].mxu0 }
  0xfb   : > { %v444_v14 = vpop.f32.mrb[0].mxu1  ;;  %v1000_v15 = vpop.f32.mrb[1].mxu0 }
  0xfc   : > { %v536_v16 = vrot.slane %v444_v14, 4  ;;  %v1035_v17 = vpop.f32.mrb[1].mxu1 }
  0xfe   : > { %v539_v18 = vsel %vm538_vm1, %v357_v13, %v536_v16 }
 0x11a   : > { %v531_v19 = vpop.f32.mrb[2].mxu0 }
 0x11b   : > { %v1165_v20 = vpack.c.bf16 %v531_v19, %v539_v18  ;;  %v1070_v21 = vpop.f32.mrb[3].mxu0 }
 0x11d   : > { %1167 = vmatpush3.bf16.msk.msra.mxu1 %vm1166_vm3, %v1165_v20 }
 0x11e   : > { %1078 = vmatprep.subr.mxu1 %v1204_v11 }
 0x120   : > { %1076 = vmatmul.mubr.msk.f32.vlgmr.msra.gmra.mrb[2].mxu1 %vm542_vm4, %v540_v22 }
 0x121   : > { %1079 = vmatpush3.msk.msra.mxu1 %vm538_vm1, %v1390_v52  ;;  %1080 = vmatprep.mubr.msk.f32.mxu1 %vm1203_vm0, %v1204_v11 }
 0x122   : > { %1168 = vmatprep.subr.bf16.mxu1 %v1202_v3 }
 0x124   : > { %1081 = vmatmul.mubr.msk.f32.vlgmr.msra.gmra.mrb[4].mxu1 %vm645_vm5, %v644_v28 }
 0x125   : > { %1089 = vmatprep.mubr.msk.f32.mxu1 %vm1203_vm0, %v1204_v11 }
 0x1f3   : > { %v615_v24 = vpop.f32.mrb[2].mxu1 }
 0x1f4   : > { %v616_v25 = vadd.f32 %v615_v24, %v541_v23  ;;  %v1077_v26 = vpop.f32.mrb[3].mxu1 }
 0x1f6   : > { %v619_v27 = vmax.f32 %v616_v25, 0.0 }
 0x1f7   : > { %v718_v43 = vpop.f32.mrb[4].mxu1 }
 0x1f8   : > { %621 = vrot.lane.b32.xlu0 %v619_v27, %s1206_s23  ;;  %v1082_v44 = vpop.f32.mrb[5].mxu1 }
 0x26a   : > { %v622_v3 = vpop.permute.xlu0 %621 }
 0x26b   : > { %v625_v29 = vsel %vm624_vm6, 0.0, %v622_v3  ;;  %v626_v30 = vsel %vm624_vm6, %v622_v3, 0.0 }
 0x26c   : > { %636 = vrot.lane.b32.xlu1 %v625_v29, %s1207_s28  ;;  %v1188_v31 = vpack.i.bf16 %v626_v30, %v625_v29 }
 0x26e   : > { %1189 = vrot.lane.b32.xlu0 %v1188_v31, %s1209_s29 }
 0x270   : > { %638 = vrot.lane.b32.xlu1 %v626_v30, %s1207_s28 }
 0x272   : > { %799 = vperm.xlu0 %1193, %v796_v33  }
 0x2de   : > { %v637_v34 = vpop.permute.xlu1 %636 }
 0x2e0   : > { %v1190_v35 = vpop.permute.xlu0 %1189 }
 0x2e1   : > { %v1192_v36 = vunpack.i.h.bf16 %v1190_v35  ;;  %v1191_v37 = vunpack.i.l.bf16 %v1190_v35 }
 0x2e2   : > { %v639_v40 = vpop.permute.xlu1 %638 }
 0x2e3   : > { %v634_v38 = vsel %vm633_vm8, %v1191_v37, %v1192_v36  ;;  %v641_v42 = vsel %vm640_vm10, %v637_v34, %v639_v40 }
 0x2e4   : > { %v1169_v39 = vpack.c.bf16 %v634_v38, %v622_v3 }
 0x2e6   : > { %1171 = vmatpush3.bf16.msk.msra.mxu1 %vm1170_vm9, %v1169_v39 }
 0x2e7   : > { %1087 = vmatprep.subr.mxu1 %v1204_v11 }
 0x2ea   : > { %1088 = vmatpush3.msra.mxu1 %v641_v42 }
 0x2eb   : > { %1090 = vmatmul.mubr.msk.f32.vlgmr.msra.gmra.mrb[6].mxu1 %vm722_vm11, %v643_v41 }
 0x2f1   : > { %v800_v46 = vpop.permute.xlu0 %799 }
 0x3be   : > { %v792_v45 = vpop.f32.mrb[6].mxu1 }
 0x3bf   : > { %v793_v47 = vadd.f32 %v792_v45, %v718_v43  ;;  %v1091_v48 = vpop.f32.mrb[7].mxu1 }
 0x3c1   : > { %v802_v49 = vadd.f32 %v800_v46, %v793_v47 }
 0x3c3   : > { %v803_v11 = vmax.f32 %v802_v49, 0.0 }
 0x3c5   : > { %804 = vst [vmem:[%s273_s14] sm:$0xff] %v803_v11 }
 0x3c6 PF: > { %s17_s24 = sadd.s32 1, %s1200_s24  }
 0x3c7   : > { %p14_p4 = scmp.ge.s32.totalorder %s17_s24, 4  }
 0x3c9   :  { %16 = sbr.rel (!%p14_p4) target bundleno = 1 (0x1), region = 80 }

</bundles_post_ra>
